<compile_context>
chip_gen: v6e
topology: v6e:2x2x1
jax: 0.10.0
libtpu: 0.0.40
codegen_flags: <defaults>
</compile_context>

<pallas_src>
import functools
import math

import jax
import jax.numpy as jnp
from jax.experimental import pallas as pl
from jax.experimental.pallas import tpu as pltpu


def _round_up(x, m):
    return (x + m - 1) // m * m


# ---------------------------------------------------------------------------
# activation (used inside the kernel and in the reference)
# ---------------------------------------------------------------------------
def _apply_activation(z, activation_mode):
    if activation_mode == "relu":
        return jnp.maximum(z, 0.0)
    elif activation_mode == "leaky_relu":
        # torch.nn.LeakyReLU default negative_slope = 0.01
        return jnp.where(z >= 0.0, z, 0.01 * z)
    elif activation_mode == "shi":
        # log(1 + exp(z)) in overflow-safe form
        return jnp.maximum(z, 0.0) + jnp.log1p(jnp.exp(-jnp.abs(z)))
    else:
        raise ValueError("activation mode not valid")


# ---------------------------------------------------------------------------
# Pallas kernel: tiled streaming matvec + bias + activation
# ---------------------------------------------------------------------------
def _glm_matvec_kernel(x_ref, w_ref, b_ref, o_ref, acc_ref, *, activation_mode):
    # x_ref : (TB, TF) VMEM     w_ref : (1, TF) VMEM     b_ref : (1,) SMEM
    # o_ref : (TB, 1)  VMEM     acc_ref: (TB, 1) f32 VMEM scratch
    k = pl.program_id(1)

    @pl.when(k == 0)
    def _():
        acc_ref[...] = jnp.zeros_like(acc_ref)

    # VPU multiply + cross-lane reduce (no MXU: output dim is 1, and the
    # kernel is HBM-bandwidth bound anyway).
    acc_ref[...] += jnp.sum(x_ref[...] * w_ref[...], axis=-1, keepdims=True)

    @pl.when(k == pl.num_programs(1) - 1)
    def _():
        z = acc_ref[...] + b_ref[0]
        o_ref[...] = _apply_activation(z, activation_mode).astype(o_ref.dtype)


def glm_matvec_forward(x2, w, b, activation_mode, *, tb_max=512, tf_max=2048):
    """x2: (B, F) f32, w: (1, F) f32, b: (1,) f32 -> (B, 1) f32."""
    B, F = x2.shape
    TB = _round_up(min(tb_max, _round_up(B, 8)), 8)       # sublane multiple
    TF = _round_up(min(tf_max, _round_up(F, 128)), 128)   # lane multiple
    Bp = _round_up(B, TB)
    Fp = _round_up(F, TF)
    # Zero-pad so blocks divide exactly (padded weight columns are zero, so
    # padded features contribute nothing; padded rows are sliced off below).
    if Bp != B or Fp != F:
        x2 = jnp.pad(x2, ((0, Bp - B), (0, Fp - F)))
    if Fp != F:
        w = jnp.pad(w, ((0, 0), (0, Fp - F)))
    nb, nk = Bp // TB, Fp // TF

    kernel = functools.partial(_glm_matvec_kernel, activation_mode=activation_mode)
    out = pl.pallas_call(
        kernel,
        grid=(nb, nk),
        out_shape=jax.ShapeDtypeStruct((Bp, 1), jnp.float32),
        in_specs=[
            pl.BlockSpec((TB, TF), lambda i, k: (i, k)),   # streamed input tile
            pl.BlockSpec((1, TF), lambda i, k: (0, k)),    # weight tile
            pl.BlockSpec(memory_space=pltpu.MemorySpace.SMEM),  # bias scalar
        ],
        out_specs=pl.BlockSpec((TB, 1), lambda i, k: (i, 0)),
        scratch_shapes=[pltpu.VMEM((TB, 1), jnp.float32)],
        compiler_params=pltpu.CompilerParams(
            dimension_semantics=("parallel", "arbitrary"),
            vmem_limit_bytes=32 * 1024 * 1024,
        ),
    )(x2, w, b)
    return out[:B]


# ---------------------------------------------------------------------------
# GLM module (parameters built deterministically in-script)
# ---------------------------------------------------------------------------
class GLM:
    def __init__(self, linear_filter_mode, activation_mode, spatial_res,
                 num_time_step, key=None, tb_max=512, tf_max=2048):
        if linear_filter_mode not in ("separate", "combined"):
            raise ValueError("linear filter mode not valid")
        if activation_mode not in ("relu", "leaky_relu", "shi"):
            raise ValueError("activation mode not valid")
        self.linear_filter_mode = linear_filter_mode
        self.activation_mode = activation_mode
        self.spatial_res = spatial_res
        self.num_time_step = num_time_step
        self.tb_max = tb_max
        self.tf_max = tf_max
        if key is None:
            key = jax.random.PRNGKey(0)

        def _uniform(k, shape, bound):
            return jax.random.uniform(k, shape, jnp.float32, -bound, bound)

        def _weight_bound(fan_in):
            # kaiming_uniform-style bound for relu/leaky_relu, xavier-ish for shi
            if activation_mode in ("relu", "leaky_relu"):
                return math.sqrt(2.0) * math.sqrt(3.0 / fan_in)
            return math.sqrt(6.0 / (fan_in + 1))

        S = spatial_res * spatial_res
        T = num_time_step
        if linear_filter_mode == "separate":
            k1, k2, k3, k4 = jax.random.split(key, 4)
            self.w_spatial = _uniform(k1, (1, S), _weight_bound(S))    # Linear(S,1).weight
            self.b_spatial = _uniform(k2, (1,), 1.0 / math.sqrt(S))    # Linear(S,1).bias
            self.w_temporal = _uniform(k3, (1, T), _weight_bound(T))   # Linear(T,1).weight
            self.b_temporal = _uniform(k4, (1,), 1.0 / math.sqrt(T))   # Linear(T,1).bias
        else:
            k1, k2 = jax.random.split(key, 2)
            F = T * S
            self.w_linear = _uniform(k1, (1, F), _weight_bound(F))     # Linear(F,1).weight
            self.b_linear = _uniform(k2, (1,), 1.0 / math.sqrt(F))     # Linear(F,1).bias
        # TODO(synk): laplacian_reg (conv2d/conv3d regularizer on the weights) is
        # training-time only and not part of forward(); not implemented in Pallas.

    def __call__(self, x):
        # x: (B, T, H, W) float32, B > 1 assumed (matches torch.squeeze semantics)
        B, T, H, W = x.shape
        F = T * H * W
        x2 = x.reshape(B, F)
        if self.linear_filter_mode == "separate":
            # Fuse the two linear filters into a single rank-1 matvec:
            #   z = sum_{t,s} wt[t]*ws[s]*x[b,t,s] + bs*sum_t wt[t] + bt
            S = H * W
            w_fused = (self.w_temporal.reshape(T, 1)
                       * self.w_spatial.reshape(1, S)).reshape(1, F)
            b_fused = self.b_spatial * jnp.sum(self.w_temporal) + self.b_temporal
            return glm_matvec_forward(x2, w_fused, b_fused, self.activation_mode,
                                      tb_max=self.tb_max, tf_max=self.tf_max)
        else:
            return glm_matvec_forward(x2, self.w_linear, self.b_linear,
                                      self.activation_mode,
                                      tb_max=self.tb_max, tf_max=self.tf_max)

    # pure-JAX reference mirroring the PyTorch forward (two-step filters)
    def reference(self, x):
        B, T, H, W = x.shape
        if self.linear_filter_mode == "separate":
            x3 = x.reshape(B, T, H * W)
            y = x3 @ self.w_spatial.T + self.b_spatial      # (B, T, 1)
            y = y[:, :, 0]                                  # torch.squeeze, B > 1
            z = y @ self.w_temporal.T + self.b_temporal     # (B, 1)
        else:
            x2 = x.reshape(B, T * H * W)
            z = x2 @ self.w_linear.T + self.b_linear        # (B, 1)
        return _apply_activation(z, self.activation_mode)


# ---------------------------------------------------------------------------
if __name__ == "__main__":
    key = jax.random.PRNGKey(0)
    kx, kp1, kp2, kp3, kx2 = jax.random.split(key, 5)

    ok = True

    # Small single-tile case (grid = (1, 1)): B=2, T=4, R=16
    B, T, R = 2, 4, 16
    x = jax.random.normal(kx, (B, T, R, R), dtype=jnp.float32)
    for mode, act, kp in (("separate", "relu", kp1), ("combined", "shi", kp2)):
        glm = GLM(linear_filter_mode=mode, activation_mode=act,
                  spatial_res=R, num_time_step=T, key=kp)
        out = jax.block_until_ready(glm(x))
        ref = glm.reference(x)
        ok &= (out.shape == (B, 1))
        ok &= bool(jnp.allclose(out, ref, atol=1e-4, rtol=1e-4))

    # Multi-tile case exercising batch tiling, reduction tiling, padding:
    # B=20 -> 3 batch tiles of 8 (padded to 24); F=1024 -> 4 reduction tiles of 256.
    B2, T2, R2 = 20, 4, 16
    x_big = jax.random.normal(kx2, (B2, T2, R2, R2), dtype=jnp.float32)
    glm2 = GLM(linear_filter_mode="separate", activation_mode="leaky_relu",
               spatial_res=R2, num_time_step=T2, key=kp3, tb_max=8, tf_max=256)
    out2 = jax.block_until_ready(glm2(x_big))
    ref2 = glm2.reference(x_big)
    ok &= (out2.shape == (B2, 1))
    ok &= bool(jnp.allclose(out2, ref2, atol=1e-4, rtol=1e-4))

    print("KERNEL_OK" if ok else "KERNEL_MISMATCH")
</pallas_src>

<mosaic_0001>
module attributes {stable_mosaic.version = 11 : i64} {
  func.func @_glm_matvec_kernel(%arg0: i32, %arg1: i32, %arg2: memref<8x1024xf32, #tpu.memory_space<vmem>>, %arg3: memref<1x1024xf32, #tpu.memory_space<vmem>>, %arg4: memref<1xf32, #tpu.memory_space<smem>>, %arg5: memref<8x1xf32, #tpu.memory_space<vmem>>, %arg6: memref<8x1xf32, #tpu.memory_space<vmem>>) attributes {dimension_semantics = [#tpu.dimension_semantics<parallel>, #tpu.dimension_semantics<arbitrary>], iteration_bounds = array<i64: 1, 1>, scalar_prefetch = 0 : i64, scratch_operands = 1 : i64, tpu.core_type = #tpu.core_type<tc>, window_params = [{transform_indices = @transform_0, window_bounds = array<i64: 8, 1024>}, {transform_indices = @transform_1, window_bounds = array<i64: 1, 1024>}, {transform_indices = @transform_2, window_bounds = array<i64: 1>}, {transform_indices = @transform_3, window_bounds = array<i64: 8, 1>}]} {
    %c0_i32 = arith.constant 0 : i32
    %0 = arith.cmpi eq, %arg1, %c0_i32 : i32
    %1 = arith.extui %0 : i1 to i32
    %c0_i32_0 = arith.constant 0 : i32
    %2 = arith.cmpi ne, %1, %c0_i32_0 : i32
    scf.if %2 {
      %cst_10 = arith.constant 0.000000e+00 : f32
      %15 = vector.broadcast %cst_10 : f32 to vector<8x1xf32>
      %c0_11 = arith.constant 0 : index
      %c0_12 = arith.constant 0 : index
      %16 = vector.load %arg6[%c0_11, %c0_12] : memref<8x1xf32, #tpu.memory_space<vmem>>, vector<8x1xf32>
      tpu.vector_store %arg6[%c0_11, %c0_12], %15 {strides = array<i32>} : memref<8x1xf32, #tpu.memory_space<vmem>>, vector<8x1xf32>,
    } else {
    }
    %c0 = arith.constant 0 : index
    %c0_1 = arith.constant 0 : index
    %3 = vector.load %arg6[%c0, %c0_1] : memref<8x1xf32, #tpu.memory_space<vmem>>, vector<8x1xf32>
    %c0_2 = arith.constant 0 : index
    %c0_3 = arith.constant 0 : index
    %4 = vector.load %arg2[%c0_2, %c0_3] : memref<8x1024xf32, #tpu.memory_space<vmem>>, vector<8x1024xf32>
    %c0_4 = arith.constant 0 : index
    %c0_5 = arith.constant 0 : index
    %5 = vector.load %arg3[%c0_4, %c0_5] : memref<1x1024xf32, #tpu.memory_space<vmem>>, vector<1x1024xf32>
    %6 = vector.broadcast %5 : vector<1x1024xf32> to vector<8x1024xf32>
    %7 = arith.mulf %4, %6 : vector<8x1024xf32>
    %cst = arith.constant dense<0.000000e+00> : vector<8xf32>
    %8 = vector.multi_reduction <add>, %7, %cst [1] : vector<8x1024xf32> to vector<8xf32>
    %9 = vector.shape_cast %8 : vector<8xf32> to vector<8x1xf32>
    %10 = arith.addf %3, %9 : vector<8x1xf32>
    %c0_6 = arith.constant 0 : index
    %c0_7 = arith.constant 0 : index
    %11 = vector.load %arg6[%c0_6, %c0_7] : memref<8x1xf32, #tpu.memory_space<vmem>>, vector<8x1xf32>
    tpu.vector_store %arg6[%c0_6, %c0_7], %10 {strides = array<i32>} : memref<8x1xf32, #tpu.memory_space<vmem>>, vector<8x1xf32>,
    %c0_i32_8 = arith.constant 0 : i32
    %12 = arith.cmpi eq, %arg1, %c0_i32_8 : i32
    %13 = arith.extui %12 : i1 to i32
    %c0_i32_9 = arith.constant 0 : i32
    %14 = arith.cmpi ne, %13, %c0_i32_9 : i32
    scf.if %14 {
      %c0_10 = arith.constant 0 : index
      %c0_11 = arith.constant 0 : index
      %15 = vector.load %arg6[%c0_10, %c0_11] : memref<8x1xf32, #tpu.memory_space<vmem>>, vector<8x1xf32>
      %c0_12 = arith.constant 0 : index
      %16 = memref.load %arg4[%c0_12] : memref<1xf32, #tpu.memory_space<smem>>
      %17 = vector.broadcast %16 : f32 to vector<8x1xf32>
      %18 = arith.addf %15, %17 : vector<8x1xf32>
      %cst_13 = arith.constant 0.000000e+00 : f32
      %19 = vector.broadcast %cst_13 : f32 to vector<8x1xf32>
      %20 = arith.maximumf %18, %19 : vector<8x1xf32>
      %c0_14 = arith.constant 0 : index
      %c0_15 = arith.constant 0 : index
      %21 = vector.load %arg5[%c0_14, %c0_15] : memref<8x1xf32, #tpu.memory_space<vmem>>, vector<8x1xf32>
      tpu.vector_store %arg5[%c0_14, %c0_15], %20 {strides = array<i32>} : memref<8x1xf32, #tpu.memory_space<vmem>>, vector<8x1xf32>,
    } else {
    }
    return
  }
  func.func @transform_0(%arg0: i32, %arg1: i32) -> (i32, i32) {
    %c0_i32 = arith.constant 0 : i32
    return %arg0, %arg1 : i32, i32
  }
  func.func @transform_1(%arg0: i32, %arg1: i32) -> (i32, i32) {
    %c0_i32 = arith.constant 0 : i32
    %c0_i32_0 = arith.constant 0 : i32
    return %c0_i32, %arg1 : i32, i32
  }
  func.func @transform_2(%arg0: i32, %arg1: i32) -> i32 {
    %c0_i32 = arith.constant 0 : i32
    %c0_i32_0 = arith.constant 0 : i32
    return %c0_i32 : i32
  }
  func.func @transform_3(%arg0: i32, %arg1: i32) -> (i32, i32) {
    %c0_i32 = arith.constant 0 : i32
    %c0_i32_0 = arith.constant 0 : i32
    return %arg0, %c0_i32 : i32, i32
  }
}

</mosaic_0001>

<bundles_post_ra>
// kernel: tpu_custom_call.1
= control target key start
LH: loop header
LB: loop body
LE: loop exit
PB: predicated region body
PF: predicated region fallthrough
CT: control target
= control target key end

     0   :  { %9 = vsyncpa [#allocation5], 0  ;;  %s216_s0 = inlined_call_operand.hbm [shape: f32[8,1024], index: 0, kind: input, shape index: {}]   ;;  %s217_s1 = inlined_call_operand.hbm [shape: f32[1,1024], index: 1, kind: input, shape index: {}]   ;;  %s218_s2 = inlined_call_operand.<no memory space> [shape: f32[1], index: 2, kind: input, shape index: {}]   ;;  %s219_s3 = inlined_call_operand.vmem [shape: f32[8,1], index: 3, kind: output, shape index: {}]  }
   0x1   :  { %10 = vsyncpa [#allocation7], 0  ;;  %s178_s12 = smov [#allocation4]   ;;  %s179_s14 = smov [#allocation6]  }
   0x2   :  { %s17_s13 = sshll.u32 %s178_s12, 4  ;;  %s27_s15 = sshll.u32 %s179_s14, 4  ;;  %s18_s13 = int_to_ptr.vmem [resolvable:$true] %s17_s13  ;;  %s28_s15 = int_to_ptr.vmem [resolvable:$true] %s27_s15 }
   0x3   :  { %s142_s16 = scalar_lea.vmem %s18_s13, 1024  ;;  %p147_p1 = scmp.lt.s32.totalorder %s18_s13, %s18_s13 }
   0x4   :  { %p143_p0 = scmp.ne.s32.totalorder %s18_s13, %s142_s16  ;;  %p148_p2 = scmp.lt.s32.totalorder %s142_s16, %s142_s16 }
   0x6   :  { %p149_p3 = por %p148_p2, %p147_p1 }
   0x8   :  { %p150_p4 = pnand %p149_p3, %p143_p0 }
   0xa   :  { %153 = shalt.err (!%p150_p4)
}
   0xb   :  { %20 = dma.hbm_to_vmem [thread:$0]  %s216_s0, 1024, %s18_s13, [#allocation5]  }
   0xc   :  { %s162_s19 = scalar_lea.vmem %s28_s15, 128  ;;  %p167_p6 = scmp.lt.s32.totalorder %s28_s15, %s28_s15 }
   0xd   :  { %p163_p5 = scmp.ne.s32.totalorder %s28_s15, %s162_s19  ;;  %p168_p7 = scmp.lt.s32.totalorder %s162_s19, %s162_s19 }
   0xf   :  { %p169_p8 = por %p168_p7, %p167_p6 }
  0x11   :  { %p170_p9 = pnand %p169_p8, %p163_p5 }
  0x13   :  { %173 = shalt.err (!%p170_p9)
}
  0x14   :  { %30 = dma.hbm_to_vmem [thread:$0]  %s217_s1, 128, %s28_s15, [#allocation7]  }
  0x15   :  { %174 = dma.done.wait [#allocation5], 1024  }
  0x16   :  { %175 = vsyncadd [#allocation5], 4294966272 }
  0x17   :  { %176 = dma.done.wait [#allocation7], 128  }
  0x18   :  { %177 = vsyncadd [#allocation7], 4294967168  ;;  %v56_v0 = vlaneseq  ;;  %vm43_vm0 = vcmask 7168   ;;  %v180_v1 = vmov 0.0   ;;  %v46_v7 = vld [vmem:[#allocation4] sm:$0xff]  ;;  %v47_v9 = vld [vmem:[#allocation4 + $0x8] sm:$0xff]  ;;  %v121_v46 = vstv %s218_s2 }
  0x19   :  { %44 = vst.msk [vmem:[#allocation2] sm:$0xff] %vm43_vm0, %v180_v1  ;;  %v48_v10 = vld [vmem:[#allocation4 + $0x10] sm:$0xff]  ;;  %v54_v11 = vld [vmem:[#allocation6] sm:$0xff]  ;;  %v49_v17 = vld [vmem:[#allocation4 + $0x18] sm:$0xff] }
  0x1a   :  { %v57_v2 = vshrl.u32 %v56_v0, 7  ;;  %v50_v23 = vld [vmem:[#allocation4 + $0x20] sm:$0xff]  ;;  %v51_v28 = vld [vmem:[#allocation4 + $0x28] sm:$0xff]  ;;  %v52_v32 = vld [vmem:[#allocation4 + $0x30] sm:$0xff] }
  0x1b   :  { %v53_v36 = vld [vmem:[#allocation4 + $0x38] sm:$0xff] }
  0x1c   :  { %v58_v3 = vsub.s32 0, %v57_v2  ;;  %v62_v4 = vsub.s32 1, %v57_v2  ;;  %v66_v5 = vsub.s32 2, %v57_v2  ;;  %v70_v6 = vsub.s32 3, %v57_v2 }
  0x1d   :  { %v74_v8 = vsub.s32 4, %v57_v2  ;;  %v78_v12 = vsub.s32 5, %v57_v2  ;;  %v82_v18 = vsub.s32 6, %v57_v2  ;;  %v86_v25 = vsub.s32 7, %v57_v2 }
  0x1e   :  { %v59_v13 = vrot.slane %v54_v11, %v58_v3  ;;  %v63_v14 = vrot.slane %v54_v11, %v62_v4  ;;  %v67_v15 = vrot.slane %v54_v11, %v66_v5  ;;  %v71_v16 = vrot.slane %v54_v11, %v70_v6 }
  0x1f   :  { %v75_v19 = vrot.slane %v54_v11, %v74_v8  ;;  %v79_v24 = vrot.slane %v54_v11, %v78_v12  ;;  %v83_v29 = vrot.slane %v54_v11, %v82_v18  ;;  %v87_v33 = vrot.slane %v54_v11, %v86_v25 }
  0x20   :  { %v96_v20 = vmul.f32 %v59_v13, %v46_v7  ;;  %v97_v21 = vmul.f32 %v63_v14, %v47_v9  ;;  %v98_v22 = vmul.f32 %v67_v15, %v48_v10  ;;  %v99_v26 = vmul.f32 %v71_v16, %v49_v17  ;;  %v45_v43 = vld [vmem:[#allocation2] sm:$0xff] }
  0x21   :  { %v100_v30 = vmul.f32 %v75_v19, %v50_v23  ;;  %v101_v34 = vmul.f32 %v79_v24, %v51_v28  ;;  %v102_v37 = vmul.f32 %v83_v29, %v52_v32  ;;  %v103_v39 = vmul.f32 %v87_v33, %v53_v36 }
  0x22   :  { %v104_v27 = vadd.f32 %v97_v21, %v96_v20 }
  0x24   :  { %v105_v31 = vadd.f32 %v104_v27, %v98_v22 }
  0x26   :  { %v106_v35 = vadd.f32 %v105_v31, %v99_v26 }
  0x28   :  { %v107_v38 = vadd.f32 %v106_v35, %v100_v30 }
  0x2a   :  { %v108_v40 = vadd.f32 %v107_v38, %v101_v34 }
  0x2c   :  { %v109_v41 = vadd.f32 %v108_v40, %v102_v37 }
  0x2e   :  { %v110_v42 = vadd.f32 %v109_v41, %v103_v39 }
  0x30   :  { %111 = vadd.xlane.f32.xlu0 %v110_v42 }
  0xb9   :  { %v112_v44 = vpop.xlane.xlu0 %111 }
  0xba   :  { %v113_v45 = vadd.f32 %v112_v44, %v45_v43 }
  0xbc   :  { %115 = vst.msk [vmem:[#allocation2] sm:$0xff] %vm43_vm0, %v113_v45 }
  0xc3   :  { %v119_v47 = vld [vmem:[#allocation2] sm:$0xff] }
  0xc4   :  { %v122_v48 = vadd.f32 %v121_v46, %v119_v47 }
  0xc6   :  { %v123_v49 = vmax.f32 %v122_v48, 0.0 }
  0xc8   :  { %124 = vst.msk [vmem:[%s219_s3] sm:$0xff] %vm43_vm0, %v123_v49 }
  0xc9   :  { %129 = vsyncpa [#allocation5], 1 }
  0xca   :  { %130 = vsyncpa [#allocation7], 1 }

</bundles_post_ra>
